<compile_context>
chip_gen: v5e
topology: v5e:2x2
jax: 0.10.0
libtpu: 0.0.40
codegen_flags: <defaults>
</compile_context>

<pallas_src>
import functools
import math

import jax
import jax.numpy as jnp
from jax.experimental import pallas as pl
from jax.experimental.pallas import tpu as pltpu


# ---------------------------------------------------------------------------
# Init-time PE buffer construction (matches torch __init__ exactly).
# ---------------------------------------------------------------------------
def build_pe(d_model, max_spatial_shape):
    assert len(max_spatial_shape) == 3, "Spatial dimension must be 3"
    assert d_model % 6 == 0, f"Feature dimension {d_model} not divisible by 6"
    X, Y, Z = max_spatial_shape
    d = d_model // 3

    div_term = jnp.exp(
        jnp.arange(0.0, d, 2, dtype=jnp.float32) * (-math.log(10000.0) / d)
    )  # (d/2,)
    pos_x = jnp.arange(0.0, X, dtype=jnp.float32)[:, None]  # (X, 1)
    pos_y = jnp.arange(0.0, Y, dtype=jnp.float32)[:, None]
    pos_z = jnp.arange(0.0, Z, dtype=jnp.float32)[:, None]

    sin_x = jnp.sin(pos_x * div_term).T  # (d/2, X)
    cos_x = jnp.cos(pos_x * div_term).T
    sin_y = jnp.sin(pos_y * div_term).T  # (d/2, Y)
    cos_y = jnp.cos(pos_y * div_term).T
    sin_z = jnp.sin(pos_z * div_term).T  # (d/2, Z)
    cos_z = jnp.cos(pos_z * div_term).T

    full = (d // 2, X, Y, Z)
    pe = jnp.zeros((d_model, X, Y, Z), jnp.float32)
    pe = pe.at[0:d:2].set(jnp.broadcast_to(sin_x[:, :, None, None], full))
    pe = pe.at[1:d:2].set(jnp.broadcast_to(cos_x[:, :, None, None], full))
    pe = pe.at[d:2 * d:2].set(jnp.broadcast_to(sin_y[:, None, :, None], full))
    pe = pe.at[d + 1:2 * d:2].set(jnp.broadcast_to(cos_y[:, None, :, None], full))
    pe = pe.at[2 * d:3 * d:2].set(jnp.broadcast_to(sin_z[:, None, None, :], full))
    pe = pe.at[2 * d + 1:3 * d:2].set(jnp.broadcast_to(cos_z[:, None, None, :], full))
    return pe


# ---------------------------------------------------------------------------
# Pallas kernel: lane-dense broadcast add.
# ---------------------------------------------------------------------------
def _add_pe_kernel(x_ref, pe_ref, o_ref):
    # x_ref:  (b, TK)  flattened (num_points * d_model) chunk, all batches
    # pe_ref: (1, TK)  matching PE chunk (broadcast over the batch rows)
    # o_ref:  (b, TK)
    o_ref[...] = x_ref[...] + pe_ref[...]


def _round_up(x, m):
    return (x + m - 1) // m * m


@functools.partial(jax.jit, static_argnames=("tile_k",))
def _add_positional_encoding(point_features, pe_flat, tile_k=32768):
    """point_features: (b, n, f); pe_flat: (n, f) -> (b, n, f)."""
    b, n, f = point_features.shape
    assert pe_flat.shape == (n, f)
    K = n * f

    x2d = point_features.reshape(b, K)
    pe2d = pe_flat.reshape(1, K)

    # Lane-dense tiling: tile along the flattened (n*f) axis in multiples of 128.
    tk = min(tile_k, _round_up(K, 128))
    k_pad = _round_up(K, tk)
    if k_pad != K:
        x2d = jnp.pad(x2d, ((0, 0), (0, k_pad - K)))
        pe2d = jnp.pad(pe2d, ((0, 0), (0, k_pad - K)))

    out2d = pl.pallas_call(
        _add_pe_kernel,
        out_shape=jax.ShapeDtypeStruct((b, k_pad), point_features.dtype),
        grid_spec=pl.GridSpec(
            grid=(k_pad // tk,),
            in_specs=[
                pl.BlockSpec((b, tk), lambda i: (0, i)),
                pl.BlockSpec((1, tk), lambda i: (0, i)),
            ],
            out_specs=pl.BlockSpec((b, tk), lambda i: (0, i)),
        ),
        compiler_params=pltpu.CompilerParams(
            dimension_semantics=("parallel",)),
    )(x2d, pe2d)

    if k_pad != K:
        out2d = out2d[:, :K]
    return out2d.reshape(b, n, f)


# ---------------------------------------------------------------------------
# Module-style forward.
# ---------------------------------------------------------------------------
def frequency_positional_encoding_3d_forward(pe, point_features,
                                             positional_input=None,
                                             grid_size=None):
    """pe: (d_model, X, Y, Z) buffer; point_features: (b, num_points, d_model).

    positional_input is accepted for signature fidelity but (as in the PyTorch
    module) unused in the forward pass.
    """
    assert point_features.ndim == 3
    d_model = pe.shape[0]
    if grid_size is None:
        grid_size = pe.shape[1:]
    gx, gy, gz = (int(grid_size[0]), int(grid_size[1]), int(grid_size[2]))
    num_points = point_features.shape[1]
    assert num_points == gx * gy * gz
    assert point_features.shape[2] == d_model

    # Pure layout glue (matches pe[:, :gx, :gy, :gz].permute(1,2,3,0).view(N, F)).
    pe_flat = (pe[:, :gx, :gy, :gz]
               .transpose(1, 2, 3, 0)
               .reshape(num_points, d_model)
               .astype(point_features.dtype))

    out = _add_positional_encoding(point_features, pe_flat)
    # TODO(synk): nn.Dropout(p=0.1) training-mode masking is not implemented;
    # eval-mode dropout is the identity, which is what is returned here.
    return out


# ---------------------------------------------------------------------------
# Self-test.
# ---------------------------------------------------------------------------
def _reference(pe, point_features):
    d_model = pe.shape[0]
    b, n, f = point_features.shape
    pe_flat = pe.transpose(1, 2, 3, 0).reshape(1, n, d_model)
    return point_features + pe_flat


if __name__ == "__main__":
    d_model = 48                      # divisible by 6
    max_spatial_shape = (4, 4, 4)     # num_points = 64
    batch = 2
    num_points = max_spatial_shape[0] * max_spatial_shape[1] * max_spatial_shape[2]

    pe = build_pe(d_model, max_spatial_shape)

    key = jax.random.PRNGKey(0)
    k1, k2 = jax.random.split(key)
    point_features = jax.random.normal(k1, (batch, num_points, d_model), jnp.float32)
    positional_input = jax.random.normal(k2, (batch, num_points, 3), jnp.float32)

    out = frequency_positional_encoding_3d_forward(pe, point_features, positional_input)
    out = jax.block_until_ready(out)

    ref = _reference(pe, point_features)

    assert out.shape == (batch, num_points, d_model), out.shape
    assert jnp.allclose(out, ref, atol=1e-6, rtol=1e-6), "mismatch vs reference"

    print("KERNEL_OK")
</pallas_src>

<mosaic_0001>
module attributes {stable_mosaic.version = 11 : i64} {
  func.func @_add_pe_kernel(%arg0: i32, %arg1: memref<2x3072xf32, #tpu.memory_space<vmem>>, %arg2: memref<1x3072xf32, #tpu.memory_space<vmem>>, %arg3: memref<2x3072xf32, #tpu.memory_space<vmem>>) attributes {dimension_semantics = [#tpu.dimension_semantics<parallel>], iteration_bounds = array<i64: 1>, scalar_prefetch = 0 : i64, scratch_operands = 0 : i64, tpu.core_type = #tpu.core_type<tc>, window_params = [{transform_indices = @transform_0, window_bounds = array<i64: 2, 3072>}, {transform_indices = @transform_1, window_bounds = array<i64: 1, 3072>}, {transform_indices = @transform_2, window_bounds = array<i64: 2, 3072>}]} {
    %c0 = arith.constant 0 : index
    %c0_0 = arith.constant 0 : index
    %0 = vector.load %arg1[%c0, %c0_0] : memref<2x3072xf32, #tpu.memory_space<vmem>>, vector<2x3072xf32>
    %c0_1 = arith.constant 0 : index
    %c0_2 = arith.constant 0 : index
    %1 = vector.load %arg2[%c0_1, %c0_2] : memref<1x3072xf32, #tpu.memory_space<vmem>>, vector<1x3072xf32>
    %2 = vector.broadcast %1 : vector<1x3072xf32> to vector<2x3072xf32>
    %3 = arith.addf %0, %2 : vector<2x3072xf32>
    %c0_3 = arith.constant 0 : index
    %c0_4 = arith.constant 0 : index
    %4 = vector.load %arg3[%c0_3, %c0_4] : memref<2x3072xf32, #tpu.memory_space<vmem>>, vector<2x3072xf32>
    tpu.vector_store %arg3[%c0_3, %c0_4], %3 {strides = array<i32>} : memref<2x3072xf32, #tpu.memory_space<vmem>>, vector<2x3072xf32>,
    return
  }
  func.func @transform_0(%arg0: i32) -> (i32, i32) {
    %c0_i32 = arith.constant 0 : i32
    %c0_i32_0 = arith.constant 0 : i32
    return %c0_i32, %arg0 : i32, i32
  }
  func.func @transform_1(%arg0: i32) -> (i32, i32) {
    %c0_i32 = arith.constant 0 : i32
    %c0_i32_0 = arith.constant 0 : i32
    return %c0_i32, %arg0 : i32, i32
  }
  func.func @transform_2(%arg0: i32) -> (i32, i32) {
    %c0_i32 = arith.constant 0 : i32
    %c0_i32_0 = arith.constant 0 : i32
    return %c0_i32, %arg0 : i32, i32
  }
}

</mosaic_0001>

<bundles_post_ra>
// kernel: _add_positional_encoding.1
= control target key start
LH: loop header
LB: loop body
LE: loop exit
PB: predicated region body
PF: predicated region fallthrough
CT: control target
= control target key end

     0   :  { %vm65_vm0 = vcmask 1041408   ;;  %vm67_vm1 = vcmask 1045508   ;;  %vm69_vm2 = vcmask 1043456   ;;  %s186_s1 = inlined_call_operand.vmem [shape: f32[1,3072], index: 1, kind: input, shape index: {}]   ;;  %s187_s0 = inlined_call_operand.vmem [shape: f32[2,3072], index: 0, kind: input, shape index: {}]   ;;  %s188_s2 = inlined_call_operand.vmem [shape: f32[2,3072], index: 2, kind: output, shape index: {}]  }
   0x1   :  { %v17_v0 = vld [vmem:[%s186_s1] sm:$0xff]  ;;  %v18_v5 = vld [vmem:[%s186_s1 + $0x8] sm:$0xff]  ;;  %v19_v32 = vld [vmem:[%s186_s1 + $0x10] sm:$0xff] }
   0x2   :  { %v23_v1 = vperm.slane %v17_v0, 0  ;;  %v24_v2 = vperm.slane %v17_v0, 1  ;;  %v25_v3 = vperm.slane %v17_v0, 2  ;;  %v26_v4 = vperm.slane %v17_v0, 3  ;;  %v11_v14 = vld [vmem:[%s187_s0] sm:$0xff]  ;;  %v12_v21 = vld [vmem:[%s187_s0 + $0x8] sm:$0xff] }
   0x3   :  { %v27_v6 = vperm.slane %v17_v0, 4  ;;  %v28_v7 = vperm.slane %v17_v0, 5  ;;  %v29_v8 = vperm.slane %v17_v0, 6  ;;  %v30_v9 = vperm.slane %v17_v0, 7  ;;  %v13_v34 = vld [vmem:[%s187_s0 + $0x10] sm:$0xff]  ;;  %v14_v50 = vld [vmem:[%s187_s0 + $0x18] sm:$0xff] }
   0x4   :  { %v47_v10 = vrot.slane %v24_v2, 6  ;;  %v48_v11 = vrot.slane %v25_v3, 4  ;;  %v49_v12 = vrot.slane %v26_v4, 2  ;;  %v31_v13 = vperm.slane %v18_v5, 0  ;;  %v15_v60 = vld [vmem:[%s187_s0 + $0x20] sm:$0xff] }
   0x5   :  { %v50_v15 = vrot.slane %v28_v7, 6  ;;  %v51_v16 = vrot.slane %v29_v8, 4  ;;  %v52_v17 = vrot.slane %v30_v9, 2  ;;  %v32_v18 = vperm.slane %v18_v5, 1 }
   0x6   :  { %v66_v19 = vsel %vm65_vm0, %v23_v1, %v47_v10  ;;  %v68_v20 = vsel %vm67_vm1, %v48_v11, %v49_v12  ;;  %v33_v22 = vperm.slane %v18_v5, 2  ;;  %v34_v23 = vperm.slane %v18_v5, 3 }
   0x7   :  { %v70_v24 = vsel %vm69_vm2, %v66_v19, %v68_v20  ;;  %v71_v25 = vsel %vm65_vm0, %v27_v6, %v50_v15  ;;  %v72_v26 = vsel %vm67_vm1, %v51_v16, %v52_v17  ;;  %v53_v27 = vrot.slane %v32_v18, 6  ;;  %v16_v6 = vld [vmem:[%s187_s0 + $0x28] sm:$0xff] }
   0x8   :  { %v92_v28 = vadd.f32 %v70_v24, %v11_v14  ;;  %v73_v29 = vsel %vm69_vm2, %v71_v25, %v72_v26  ;;  %v54_v30 = vrot.slane %v33_v22, 4  ;;  %v55_v31 = vrot.slane %v34_v23, 2 }
   0x9   :  { %v93_v33 = vadd.f32 %v73_v29, %v12_v21  ;;  %v74_v35 = vsel %vm65_vm0, %v31_v13, %v53_v27  ;;  %v35_v36 = vperm.slane %v18_v5, 4  ;;  %v36_v37 = vperm.slane %v18_v5, 5 }
   0xa   :  { %98 = vst [vmem:[%s188_s2] sm:$0xff] %v92_v28  ;;  %v75_v38 = vsel %vm67_vm1, %v54_v30, %v55_v31  ;;  %v37_v39 = vperm.slane %v18_v5, 6  ;;  %v38_v40 = vperm.slane %v18_v5, 7  ;;  %v39_v41 = vperm.slane %v19_v32, 0 }
   0xb   :  { %99 = vst [vmem:[%s188_s2 + $0x8] sm:$0xff] %v93_v33  ;;  %v76_v42 = vsel %vm69_vm2, %v74_v35, %v75_v38  ;;  %v56_v43 = vrot.slane %v36_v37, 6  ;;  %v40_v44 = vperm.slane %v19_v32, 1  ;;  %v41_v45 = vperm.slane %v19_v32, 2 }
   0xc   :  { %v94_v46 = vadd.f32 %v76_v42, %v13_v34  ;;  %v57_v47 = vrot.slane %v37_v39, 4  ;;  %v58_v48 = vrot.slane %v38_v40, 2  ;;  %v42_v49 = vperm.slane %v19_v32, 3 }
   0xd   :  { %v77_v51 = vsel %vm65_vm0, %v35_v36, %v56_v43  ;;  %v59_v52 = vrot.slane %v40_v44, 6  ;;  %v60_v53 = vrot.slane %v41_v45, 4  ;;  %v43_v54 = vperm.slane %v19_v32, 4 }
   0xe   :  { %100 = vst [vmem:[%s188_s2 + $0x10] sm:$0xff] %v94_v46  ;;  %v78_v55 = vsel %vm67_vm1, %v57_v47, %v58_v48  ;;  %v61_v56 = vrot.slane %v42_v49, 2  ;;  %v44_v57 = vperm.slane %v19_v32, 5  ;;  %v45_v58 = vperm.slane %v19_v32, 6 }
   0xf   :  { %v79_v59 = vsel %vm69_vm2, %v77_v51, %v78_v55  ;;  %v80_v61 = vsel %vm65_vm0, %v39_v41, %v59_v52  ;;  %v46_v62 = vperm.slane %v19_v32, 7 }
  0x10   :  { %v95_v63 = vadd.f32 %v79_v59, %v14_v50  ;;  %v81_v0 = vsel %vm67_vm1, %v60_v53, %v61_v56  ;;  %v62_v1 = vrot.slane %v44_v57, 6  ;;  %v63_v2 = vrot.slane %v45_v58, 4 }
  0x11   :  { %v82_v3 = vsel %vm69_vm2, %v80_v61, %v81_v0  ;;  %v64_v4 = vrot.slane %v46_v62, 2 }
  0x12   :  { %101 = vst [vmem:[%s188_s2 + $0x18] sm:$0xff] %v95_v63  ;;  %v96_v5 = vadd.f32 %v82_v3, %v15_v60  ;;  %v83_v7 = vsel %vm65_vm0, %v43_v54, %v62_v1 }
  0x13   :  { %v84_v8 = vsel %vm67_vm1, %v63_v2, %v64_v4 }
  0x14   :  { %102 = vst [vmem:[%s188_s2 + $0x20] sm:$0xff] %v96_v5  ;;  %v85_v9 = vsel %vm69_vm2, %v83_v7, %v84_v8 }
  0x15   :  { %v97_v10 = vadd.f32 %v85_v9, %v16_v6 }
  0x17   :  { %103 = vst [vmem:[%s188_s2 + $0x28] sm:$0xff] %v97_v10 }

</bundles_post_ra>
